<compile_context>
chip_gen: v5e
topology: v5e:2x2
jax: 0.10.0
libtpu: 0.0.40
codegen_flags: <defaults>
</compile_context>

<pallas_src>
import jax
import jax.numpy as jnp
from jax.experimental import pallas as pl
from jax.experimental.pallas import tpu as pltpu


def _round_up(n, m):
    return ((n + m - 1) // m) * m


# ---------------------------------------------------------------------------
# Kernel
# ---------------------------------------------------------------------------
def mlp_kernel(x_ref, w1_ref, b1_ref, w2_ref, b2_ref, o_ref):
    # x_ref:  [TB, D]  f32      w1_ref: [D, Hp]  bf16     b1_ref: [1, Hp] f32
    # w2_ref: [Hp, Op] bf16     b2_ref: [1, Op]  f32      o_ref:  [TB, O]  f32
    O = o_ref.shape[-1]

    x = x_ref[...].astype(jnp.bfloat16)  # bf16 MXU operands, f32 accumulation

    # fc1 + ReLU (bias add / ReLU in f32 on the VPU)
    h = jnp.dot(x, w1_ref[...], preferred_element_type=jnp.float32) + b1_ref[...]
    h = jnp.maximum(h, 0.0)

    # fc2.  Padded output lanes carry bias -1e30 (finite!) -> exp underflows to exactly
    # 0, so they contribute nothing to the softmax max or denominator.
    logits = jnp.dot(h.astype(jnp.bfloat16), w2_ref[...],
                     preferred_element_type=jnp.float32) + b2_ref[...]

    # Numerically stable softmax along the last axis.  Exact division so each row
    # sums to 1.0 up to f32 rounding (approx reciprocal was not accurate enough).
    m = jnp.max(logits, axis=-1, keepdims=True)
    e = jnp.exp(logits - m)
    denom = jnp.sum(e, axis=-1, keepdims=True)
    probs = e / denom

    # Store only the real O output columns (masked store for a tiny tile; far cheaper
    # than writing the full 128-lane padded slab to HBM and slicing it afterwards).
    o_ref[...] = probs[:, :O].astype(o_ref.dtype)


# ---------------------------------------------------------------------------
# One-time parameter preparation (call ONCE, reuse across forward calls)
# ---------------------------------------------------------------------------
def prepare_params(w1, b1, w2, b2):
    """Pad hidden/output dims to multiples of 128 and store weights as bf16.

    w1: [D, H], b1: [H], w2: [H, O], b2: [O].
    Zero-padded hidden units stay exactly zero through ReLU; padded output lanes
    get bias -1e30 (finite, so max stays well-defined) -> zero softmax probability.
    Returns (w1_p, b1_p, w2_p, b2_p, O).
    """
    D, H = w1.shape
    _, O = w2.shape
    Hp = _round_up(H, 128)
    Op = _round_up(O, 128)

    w1_p = jnp.zeros((D, Hp), jnp.bfloat16).at[:, :H].set(w1.astype(jnp.bfloat16))
    b1_p = jnp.zeros((1, Hp), jnp.float32).at[:, :H].set(b1.astype(jnp.float32))
    w2_p = jnp.zeros((Hp, Op), jnp.bfloat16).at[:H, :O].set(w2.astype(jnp.bfloat16))
    b2_p = jnp.full((1, Op), -1e30, jnp.float32).at[:, :O].set(b2.astype(jnp.float32))
    return w1_p, b1_p, w2_p, b2_p, int(O)


# ---------------------------------------------------------------------------
# VMEM budgeting / batch-tile selection
# ---------------------------------------------------------------------------
def _vmem_bytes_estimate(tb, D, Hp, Op, O):
    """Rough per-call VMEM footprint for tile size tb."""
    x_bytes = 2 * tb * D * 4                         # double-buffered x blocks (f32)
    out_bytes = 2 * tb * O * 4                       # double-buffered out blocks (f32)
    w_bytes = 2 * (D * Hp * 2 + Hp * Op * 2          # weights (bf16, pipeline-buffered)
                   + Hp * 4 + Op * 4)                # biases (f32)
    scratch = tb * (2 * D + 12 * Hp)                 # bf16 x copy + h/logits/e temporaries
    return x_bytes + out_bytes + w_bytes + scratch


def _choose_tb(B, D, Hp, Op, O, vmem_budget):
    """Pick a batch tile: >= 2 grid steps when possible (dual-TC on v7x), multiple of 8,
    capped at 512 rows, shrunk until the VMEM estimate fits the budget."""
    if B <= 8:
        return B                                     # single block == full array dim
    tb = min(512, _round_up(pl.cdiv(B, 2), 8))       # at least 2 grid steps
    while tb > 8 and _vmem_bytes_estimate(tb, D, Hp, Op, O) > vmem_budget:
        tb = max(8, _round_up(tb // 2, 8))
    return tb


# ---------------------------------------------------------------------------
# Forward
# ---------------------------------------------------------------------------
def mlp_forward(x_nchw, params):
    """x_nchw: [B, C, H, W] float32.  params from prepare_params().
    Returns softmax probabilities [B, O] (f32)."""
    w1_p, b1_p, w2_p, b2_p, O = params
    B = x_nchw.shape[0]
    x2d = x_nchw.reshape(B, -1)                      # torch.flatten(x, 1)
    D = x2d.shape[1]
    Hp = w1_p.shape[1]
    Op = w2_p.shape[1]
    assert w1_p.shape[0] == D, "flattened input dim does not match fc1"

    VMEM_BUDGET = 40 << 20                           # leave headroom under v7x 64 MiB
    TB = _choose_tb(B, D, Hp, Op, O, VMEM_BUDGET)
    grid = (pl.cdiv(B, TB),)
    vmem_limit = int(min(64 << 20,
                         max(32 << 20,
                             int(1.5 * _vmem_bytes_estimate(TB, D, Hp, Op, O)))))

    # Note: if B % TB != 0, the last x block contains unspecified rows beyond B; softmax
    # is row-wise and out-of-bounds output rows are dropped, so real rows are unaffected.
    cost = pl.CostEstimate(
        flops=2 * B * D * Hp + 2 * B * Hp * Op,
        transcendentals=B * Op,                       # exp
        bytes_accessed=(x2d.size * 4 + w1_p.size * 2 + w2_p.size * 2
                        + b1_p.size * 4 + b2_p.size * 4 + B * O * 4),
    )

    out = pl.pallas_call(
        mlp_kernel,
        out_shape=jax.ShapeDtypeStruct((B, O), jnp.float32),
        grid_spec=pltpu.PrefetchScalarGridSpec(
            num_scalar_prefetch=0,
            grid=grid,
            in_specs=[
                pl.BlockSpec((TB, D), lambda i: (i, 0)),   # x: tiled over batch
                pl.BlockSpec((D, Hp), lambda i: (0, 0)),   # w1: resident
                pl.BlockSpec((1, Hp), lambda i: (0, 0)),   # b1: resident
                pl.BlockSpec((Hp, Op), lambda i: (0, 0)),  # w2: resident
                pl.BlockSpec((1, Op), lambda i: (0, 0)),   # b2: resident
            ],
            # Last block dim O equals the full array dim -> legal despite O < 128.
            out_specs=pl.BlockSpec((TB, O), lambda i: (i, 0)),
        ),
        compiler_params=pltpu.CompilerParams(
            dimension_semantics=("parallel",),             # independent batch blocks
            vmem_limit_bytes=vmem_limit,
        ),
        cost_estimate=cost,
    )(x2d, w1_p, b1_p, w2_p, b2_p)

    return out


def init_linear_params(key, in_features, out_features):
    """Deterministic init mimicking nn.Linear default (uniform +-1/sqrt(fan_in)).
    Weight is stored as [in_features, out_features]."""
    kw, kb = jax.random.split(key)
    bound = 1.0 / jnp.sqrt(in_features)
    w = jax.random.uniform(kw, (in_features, out_features), jnp.float32, -bound, bound)
    b = jax.random.uniform(kb, (out_features,), jnp.float32, -bound, bound)
    return w, b


if __name__ == "__main__":
    # Small shapes: batch=2, channels=4, spatial=16x16 -> input_dim = 4*16*16 = 1024
    B, C, Himg, Wimg = 2, 4, 16, 16
    input_dim = C * Himg * Wimg
    num_neuron = 32
    output_dim = 8

    key = jax.random.PRNGKey(0)
    kx, k1, k2 = jax.random.split(key, 3)

    x = jax.random.normal(kx, (B, C, Himg, Wimg), dtype=jnp.float32)
    w1, b1 = init_linear_params(k1, input_dim, num_neuron)
    w2, b2 = init_linear_params(k2, num_neuron, output_dim)

    # Weight prep happens once, outside the per-forward path.
    params = prepare_params(w1, b1, w2, b2)

    out = mlp_forward(x, params)
    out = jax.block_until_ready(out)

    # Sanity check against plain-JAX f32 reference.  Element tolerance accounts for the
    # bf16 MXU operands; row sums are exact to f32 rounding (exact division in softmax).
    x2d = x.reshape(B, -1)
    ref = jax.nn.softmax(jnp.maximum(x2d @ w1 + b1, 0.0) @ w2 + b2, axis=1)
    assert out.shape == (B, output_dim)
    assert jnp.allclose(out, ref, atol=1e-2, rtol=1e-2)
    assert jnp.allclose(jnp.sum(out, axis=1), 1.0, atol=2e-3)

    print("KERNEL_OK")
</pallas_src>

<mosaic_0001>
module attributes {stable_mosaic.version = 11 : i64} {
  func.func @mlp_kernel(%arg0: i32, %arg1: memref<2x1024xf32, #tpu.memory_space<vmem>>, %arg2: memref<1024x128xbf16, #tpu.memory_space<vmem>>, %arg3: memref<1x128xf32, #tpu.memory_space<vmem>>, %arg4: memref<128x128xbf16, #tpu.memory_space<vmem>>, %arg5: memref<1x128xf32, #tpu.memory_space<vmem>>, %arg6: memref<2x8xf32, #tpu.memory_space<vmem>>) attributes {dimension_semantics = [#tpu.dimension_semantics<parallel>], iteration_bounds = array<i64: 1>, scalar_prefetch = 0 : i64, scratch_operands = 0 : i64, tpu.core_type = #tpu.core_type<tc>, window_params = [{transform_indices = @transform_0, window_bounds = array<i64: 2, 1024>}, {pipeline_mode = #tpu.pipeline_mode<synchronous>, transform_indices = @transform_1, window_bounds = array<i64: 1024, 128>}, {pipeline_mode = #tpu.pipeline_mode<synchronous>, transform_indices = @transform_2, window_bounds = array<i64: 1, 128>}, {pipeline_mode = #tpu.pipeline_mode<synchronous>, transform_indices = @transform_3, window_bounds = array<i64: 128, 128>}, {pipeline_mode = #tpu.pipeline_mode<synchronous>, transform_indices = @transform_4, window_bounds = array<i64: 1, 128>}, {transform_indices = @transform_5, window_bounds = array<i64: 2, 8>}]} {
    %c0 = arith.constant 0 : index
    %c0_0 = arith.constant 0 : index
    %0 = vector.load %arg1[%c0, %c0_0] : memref<2x1024xf32, #tpu.memory_space<vmem>>, vector<2x1024xf32>
    %1 = arith.truncf %0 : vector<2x1024xf32> to vector<2x1024xbf16>
    %c0_1 = arith.constant 0 : index
    %c0_2 = arith.constant 0 : index
    %2 = vector.load %arg2[%c0_1, %c0_2] : memref<1024x128xbf16, #tpu.memory_space<vmem>>, vector<1024x128xbf16>
    %cst = arith.constant dense<0.000000e+00> : vector<2x128xf32>
    %3 = tpu.matmul %1, %2, %cst {dimension_numbers = #tpu.dot_dimension_numbers<[1], [0], [0], [1], [0, 0, 1, 1], [], []>} : vector<2x1024xbf16>, vector<1024x128xbf16>, vector<2x128xf32> -> vector<2x128xf32>
    %c0_3 = arith.constant 0 : index
    %c0_4 = arith.constant 0 : index
    %4 = vector.load %arg3[%c0_3, %c0_4] : memref<1x128xf32, #tpu.memory_space<vmem>>, vector<1x128xf32>
    %5 = vector.broadcast %4 : vector<1x128xf32> to vector<2x128xf32>
    %6 = arith.addf %3, %5 : vector<2x128xf32>
    %cst_5 = arith.constant 0.000000e+00 : f32
    %7 = vector.broadcast %cst_5 : f32 to vector<2x128xf32>
    %8 = arith.maximumf %6, %7 : vector<2x128xf32>
    %9 = arith.truncf %8 : vector<2x128xf32> to vector<2x128xbf16>
    %c0_6 = arith.constant 0 : index
    %c0_7 = arith.constant 0 : index
    %10 = vector.load %arg4[%c0_6, %c0_7] : memref<128x128xbf16, #tpu.memory_space<vmem>>, vector<128x128xbf16>
    %cst_8 = arith.constant dense<0.000000e+00> : vector<2x128xf32>
    %11 = tpu.matmul %9, %10, %cst_8 {dimension_numbers = #tpu.dot_dimension_numbers<[1], [0], [0], [1], [0, 0, 1, 1], [], []>} : vector<2x128xbf16>, vector<128x128xbf16>, vector<2x128xf32> -> vector<2x128xf32>
    %c0_9 = arith.constant 0 : index
    %c0_10 = arith.constant 0 : index
    %12 = vector.load %arg5[%c0_9, %c0_10] : memref<1x128xf32, #tpu.memory_space<vmem>>, vector<1x128xf32>
    %13 = vector.broadcast %12 : vector<1x128xf32> to vector<2x128xf32>
    %14 = arith.addf %11, %13 : vector<2x128xf32>
    %cst_11 = arith.constant dense<0xFF800000> : vector<2xf32>
    %15 = vector.multi_reduction <maximumf>, %14, %cst_11 [1] : vector<2x128xf32> to vector<2xf32>
    %16 = vector.shape_cast %15 : vector<2xf32> to vector<2x1xf32>
    %17 = vector.broadcast %16 : vector<2x1xf32> to vector<2x128xf32>
    %18 = arith.subf %14, %17 : vector<2x128xf32>
    %19 = math.exp %18 : vector<2x128xf32>
    %cst_12 = arith.constant dense<0.000000e+00> : vector<2xf32>
    %20 = vector.multi_reduction <add>, %19, %cst_12 [1] : vector<2x128xf32> to vector<2xf32>
    %21 = vector.shape_cast %20 : vector<2xf32> to vector<2x1xf32>
    %22 = vector.broadcast %21 : vector<2x1xf32> to vector<2x128xf32>
    %23 = arith.divf %19, %22 : vector<2x128xf32>
    %24 = vector.extract_strided_slice %23 {offsets = [0, 0], sizes = [2, 8], strides = [1, 1]} : vector<2x128xf32> to vector<2x8xf32>
    %c0_13 = arith.constant 0 : index
    %c0_14 = arith.constant 0 : index
    %25 = vector.load %arg6[%c0_13, %c0_14] : memref<2x8xf32, #tpu.memory_space<vmem>>, vector<2x8xf32>
    tpu.vector_store %arg6[%c0_13, %c0_14], %24 {strides = array<i32>} : memref<2x8xf32, #tpu.memory_space<vmem>>, vector<2x8xf32>,
    return
  }
  func.func @transform_0(%arg0: i32) -> (i32, i32) {
    %c0_i32 = arith.constant 0 : i32
    %c0_i32_0 = arith.constant 0 : i32
    return %arg0, %c0_i32 : i32, i32
  }
  func.func @transform_1(%arg0: i32) -> (i32, i32) {
    %c0_i32 = arith.constant 0 : i32
    %c0_i32_0 = arith.constant 0 : i32
    %c0_i32_1 = arith.constant 0 : i32
    return %c0_i32, %c0_i32_0 : i32, i32
  }
  func.func @transform_2(%arg0: i32) -> (i32, i32) {
    %c0_i32 = arith.constant 0 : i32
    %c0_i32_0 = arith.constant 0 : i32
    %c0_i32_1 = arith.constant 0 : i32
    return %c0_i32, %c0_i32_0 : i32, i32
  }
  func.func @transform_3(%arg0: i32) -> (i32, i32) {
    %c0_i32 = arith.constant 0 : i32
    %c0_i32_0 = arith.constant 0 : i32
    %c0_i32_1 = arith.constant 0 : i32
    return %c0_i32, %c0_i32_0 : i32, i32
  }
  func.func @transform_4(%arg0: i32) -> (i32, i32) {
    %c0_i32 = arith.constant 0 : i32
    %c0_i32_0 = arith.constant 0 : i32
    %c0_i32_1 = arith.constant 0 : i32
    return %c0_i32, %c0_i32_0 : i32, i32
  }
  func.func @transform_5(%arg0: i32) -> (i32, i32) {
    %c0_i32 = arith.constant 0 : i32
    %c0_i32_0 = arith.constant 0 : i32
    return %arg0, %c0_i32 : i32, i32
  }
}

</mosaic_0001>

<bundles_post_ra>
// kernel: tpu_custom_call.1
= control target key start
LH: loop header
LB: loop body
LE: loop exit
PB: predicated region body
PF: predicated region fallthrough
CT: control target
= control target key end

     0   :  { %10 = vsyncpa [#allocation3], 0  ;;  %s1373_s0 = inlined_call_operand.hbm [shape: f32[2,1024], index: 0, kind: input, shape index: {}]   ;;  %s1374_s1 = inlined_call_operand.hbm [shape: bf16[1024,128], index: 1, kind: input, shape index: {}]   ;;  %s1375_s2 = inlined_call_operand.vmem [shape: f32[1,128], index: 2, kind: input, shape index: {}]   ;;  %s1376_s3 = inlined_call_operand.hbm [shape: bf16[128,128], index: 3, kind: input, shape index: {}]   ;;  %s1377_s4 = inlined_call_operand.vmem [shape: f32[1,128], index: 4, kind: input, shape index: {}]   ;;  %s1378_s5 = inlined_call_operand.hbm [shape: f32[2,8], index: 5, kind: output, shape index: {}]  }
   0x1   :  { %11 = vsyncpa [#allocation6], 0  ;;  %s28_s20 = sshll.u32 %s1374_s1, 4  ;;  %s29_s20 = int_to_ptr.hbm [resolvable:$true] %s28_s20 }
   0x2   :  { %12 = vsyncpa [#allocation4], 0  ;;  %s1319_s21 = smov [#allocation5]   ;;  %s18_s25 = sshll.u32 %s1373_s0, 4  ;;  %s19_s25 = int_to_ptr.hbm [resolvable:$true] %s18_s25 }
   0x3   :  { %s30_s22 = sshll.u32 %s1319_s21, 4  ;;  %s1320_s26 = smov 64   ;;  %s31_s22 = int_to_ptr.vmem [resolvable:$true] %s30_s22 }
   0x4   :  { %s1321_s27 = smov 4   ;;  %s1322_s28 = smov [#allocation2]  }
   0x5   :  { %36 = dma.hbm_to_vmem [thread:$0]  %s29_s20, 8192, %s31_s22, [#allocation6], %s1320_s26, %s1320_s26, %s1321_s27  }
   0x6   :  { %s20_s29 = sshll.u32 %s1322_s28, 4  ;;  %s43_s7 = sshll.u32 %s1376_s3, 4  ;;  %s21_s29 = int_to_ptr.vmem [resolvable:$true] %s20_s29  ;;  %s44_s7 = int_to_ptr.hbm [resolvable:$true] %s43_s7 }
   0x7   :  { %23 = dma.hbm_to_vmem [thread:$0]  %s19_s25, 256, %s21_s29, [#allocation3]  }
   0x8   :  { %s1323_s1 = smov [#allocation7]  }
   0x9   :  { %s45_s8 = sshll.u32 %s1323_s1, 4  ;;  %s46_s8 = int_to_ptr.vmem [resolvable:$true] %s45_s8 }
   0xa   :  { %51 = dma.hbm_to_vmem [thread:$0]  %s44_s7, 1024, %s46_s8, [#allocation6], %s1320_s26, %s1320_s26, %s1321_s27  }
   0xb   :  { %1313 = dma.done.wait [#allocation3], 256  }
   0xc   :  { %1314 = vsyncadd [#allocation3], 4294967040 }
   0xd   :  { %1315 = dma.done.wait [#allocation6], 9216  }
   0xe   :  { %1316 = vsyncadd [#allocation6], 4294958080  ;;  %v1140_v0 = vld [vmem:[#allocation5 + $0x38] sm:$0xff]  ;;  %v1139_v4 = vld [vmem:[#allocation5 + $0x30] sm:$0xff]  ;;  %vm800_vm0 = vcmask 1041408   ;;  %s834_s13 = sshll.u32 %s1378_s5, 4  ;;  %s835_s13 = int_to_ptr.hbm [resolvable:$true] %s834_s13 }
   0xf   :  { %v1148_v1 = vld [vmem:[#allocation5 + $0x78] sm:$0xff]  ;;  %613 = vmatpush.bf16.msra.mxu0 %v1140_v0  ;;  %v1147_v5 = vld [vmem:[#allocation5 + $0x70] sm:$0xff]  ;;  %v1138_v8 = vld [vmem:[#allocation5 + $0x28] sm:$0xff]  ;;  %vm825_vm5 = vcmask 58368  }
  0x10   :  { %v1156_v2 = vld [vmem:[#allocation5 + $0xb8] sm:$0xff]  ;;  %626 = vmatpush.bf16.msra.mxu1 %v1148_v1  ;;  %v1155_v6 = vld [vmem:[#allocation5 + $0xb0] sm:$0xff]  ;;  %v1146_v9 = vld [vmem:[#allocation5 + $0x68] sm:$0xff] }
  0x11   :  { %v1164_v3 = vld [vmem:[#allocation5 + $0xf8] sm:$0xff]  ;;  %639 = vmatpush.bf16.msra.mxu2 %v1156_v2  ;;  %v1163_v7 = vld [vmem:[#allocation5 + $0xf0] sm:$0xff]  ;;  %v1154_v10 = vld [vmem:[#allocation5 + $0xa8] sm:$0xff] }
  0x12   :  { %652 = vmatpush.bf16.msra.mxu3 %v1164_v3  ;;  %v1162_v11 = vld [vmem:[#allocation5 + $0xe8] sm:$0xff]  ;;  %v1137_v12 = vld [vmem:[#allocation5 + $0x20] sm:$0xff]  ;;  %v66_v16 = vld [vmem:[#allocation2] sm:$0xff] }
  0x13   :  { %614 = vmatpush.bf16.msra.mxu0 %v1139_v4  ;;  %v1145_v13 = vld [vmem:[#allocation5 + $0x60] sm:$0xff]  ;;  %v1136_v17 = vld [vmem:[#allocation5 + $0x18] sm:$0xff]  ;;  %70 = vst [vmem:[#allocation1] ss:$4 sm:$0xff] %v66_v16  ;;  %v1135_v21 = vld [vmem:[#allocation5 + $0x10] sm:$0xff] }
  0x14   :  { %627 = vmatpush.bf16.msra.mxu1 %v1147_v5  ;;  %v1153_v14 = vld [vmem:[#allocation5 + $0xa0] sm:$0xff]  ;;  %v1144_v18 = vld [vmem:[#allocation5 + $0x58] sm:$0xff]  ;;  %v1143_v22 = vld [vmem:[#allocation5 + $0x50] sm:$0xff] }
  0x15   :  { %640 = vmatpush.bf16.msra.mxu2 %v1155_v6  ;;  %v1161_v15 = vld [vmem:[#allocation5 + $0xe0] sm:$0xff]  ;;  %v1152_v19 = vld [vmem:[#allocation5 + $0x98] sm:$0xff]  ;;  %v1151_v23 = vld [vmem:[#allocation5 + $0x90] sm:$0xff] }
  0x16   :  { %653 = vmatpush.bf16.msra.mxu3 %v1163_v7  ;;  %v1160_v20 = vld [vmem:[#allocation5 + $0xd8] sm:$0xff]  ;;  %v1159_v24 = vld [vmem:[#allocation5 + $0xd0] sm:$0xff]  ;;  %v1134_v25 = vld [vmem:[#allocation5 + $0x8] sm:$0xff] }
  0x17   :  { %615 = vmatpush.bf16.msra.mxu0 %v1138_v8  ;;  %v1142_v26 = vld [vmem:[#allocation5 + $0x48] sm:$0xff]  ;;  %v67_v29 = vld [vmem:[#allocation2 + $0x8] sm:$0xff]  ;;  %v1133_v30 = vld [vmem:[#allocation5] sm:$0xff] }
  0x18   :  { %628 = vmatpush.bf16.msra.mxu1 %v1146_v9  ;;  %v1150_v27 = vld [vmem:[#allocation5 + $0x88] sm:$0xff]  ;;  %v1141_v31 = vld [vmem:[#allocation5 + $0x40] sm:$0xff]  ;;  %72 = vst [vmem:[#allocation1 + $0x20] ss:$4 sm:$0xff] %v67_v29  ;;  %v1172_v34 = vld [vmem:[#allocation5 + $0x138] sm:$0xff] }
  0x19   :  { %641 = vmatpush.bf16.msra.mxu2 %v1154_v10  ;;  %v1158_v28 = vld [vmem:[#allocation5 + $0xc8] sm:$0xff]  ;;  %v1149_v32 = vld [vmem:[#allocation5 + $0x80] sm:$0xff]  ;;  %v1180_v35 = vld [vmem:[#allocation5 + $0x178] sm:$0xff] }
  0x1a   :  { %654 = vmatpush.bf16.msra.mxu3 %v1162_v11  ;;  %v1157_v33 = vld [vmem:[#allocation5 + $0xc0] sm:$0xff]  ;;  %v75_v36 = vld.sshfl [vmem:[#allocation1 + $0x10] sm:$0xff pattern:$0x73625140]  ;;  %v1171_v46 = vld [vmem:[#allocation5 + $0x130] sm:$0xff] }
  0x1b   :  { %616 = vmatpush.bf16.msra.mxu0 %v1137_v12  ;;  %v73_v37 = vld.sshfl [vmem:[#allocation1] sm:$0xff pattern:$0x73625140]  ;;  %v76_v38 = vld.sshfl [vmem:[#allocation1 + $0x18] sm:$0xff pattern:$0x73625140]  ;;  %v91_v42 = vpack.c.bf16 %v75_v36, %v75_v36 }
  0x1c   :  { %629 = vmatpush.bf16.msra.mxu1 %v1145_v13  ;;  %v74_v39 = vld.sshfl [vmem:[#allocation1 + $0x8] sm:$0xff pattern:$0x73625140]  ;;  %v1188_v40 = vld [vmem:[#allocation5 + $0x1b8] sm:$0xff]  ;;  %v89_v43 = vpack.c.bf16 %v73_v37, %v73_v37  ;;  %v92_v44 = vpack.c.bf16 %v76_v38, %v76_v38  ;;  %v1170_v50 = vld [vmem:[#allocation5 + $0x128] sm:$0xff] }
  0x1d   :  { %642 = vmatpush.bf16.msra.mxu2 %v1153_v14  ;;  %v1196_v41 = vld [vmem:[#allocation5 + $0x1f8] sm:$0xff]  ;;  %v90_v45 = vpack.c.bf16 %v74_v39, %v74_v39  ;;  %v1179_v47 = vld [vmem:[#allocation5 + $0x170] sm:$0xff]  ;;  %v1178_v51 = vld [vmem:[#allocation5 + $0x168] sm:$0xff] }
  0x1e   :  { %655 = vmatpush.bf16.msra.mxu3 %v1161_v15  ;;  %v1187_v48 = vld [vmem:[#allocation5 + $0x1b0] sm:$0xff]  ;;  %v1186_v52 = vld [vmem:[#allocation5 + $0x1a8] sm:$0xff]  ;;  %v1169_v54 = vld [vmem:[#allocation5 + $0x120] sm:$0xff] }
  0x1f   :  { %617 = vmatpush.bf16.msra.mxu0 %v1136_v17  ;;  %v1195_v49 = vld [vmem:[#allocation5 + $0x1f0] sm:$0xff]  ;;  %v1194_v53 = vld [vmem:[#allocation5 + $0x1e8] sm:$0xff]  ;;  %v1177_v55 = vld [vmem:[#allocation5 + $0x160] sm:$0xff] }
  0x20   :  { %630 = vmatpush.bf16.msra.mxu1 %v1144_v18  ;;  %v1185_v56 = vld [vmem:[#allocation5 + $0x1a0] sm:$0xff]  ;;  %v1168_v58 = vld [vmem:[#allocation5 + $0x118] sm:$0xff]  ;;  %v1167_v62 = vld [vmem:[#allocation5 + $0x110] sm:$0xff] }
  0x21   :  { %643 = vmatpush.bf16.msra.mxu2 %v1152_v19  ;;  %v1193_v57 = vld [vmem:[#allocation5 + $0x1e0] sm:$0xff]  ;;  %v1176_v59 = vld [vmem:[#allocation5 + $0x158] sm:$0xff]  ;;  %v1175_v63 = vld [vmem:[#allocation5 + $0x150] sm:$0xff] }
  0x22   :  { %656 = vmatpush.bf16.msra.mxu3 %v1160_v20  ;;  %v1184_v60 = vld [vmem:[#allocation5 + $0x198] sm:$0xff]  ;;  %v1183_v0 = vld [vmem:[#allocation5 + $0x190] sm:$0xff]  ;;  %v1166_v2 = vld [vmem:[#allocation5 + $0x108] sm:$0xff] }
  0x23   :  { %618 = vmatpush.bf16.msra.mxu0 %v1135_v21  ;;  %v1192_v61 = vld [vmem:[#allocation5 + $0x1d8] sm:$0xff]  ;;  %v1191_v1 = vld [vmem:[#allocation5 + $0x1d0] sm:$0xff]  ;;  %v1174_v3 = vld [vmem:[#allocation5 + $0x148] sm:$0xff] }
  0x24   :  { %631 = vmatpush.bf16.msra.mxu1 %v1143_v22  ;;  %v1182_v4 = vld [vmem:[#allocation5 + $0x188] sm:$0xff]  ;;  %v1165_v6 = vld [vmem:[#allocation5 + $0x100] sm:$0xff]  ;;  %v78_v11 = vld.sshfl [vmem:[#allocation1 + $0x28] sm:$0xff pattern:$0x73625140] }
  0x25   :  { %644 = vmatpush.bf16.msra.mxu2 %v1151_v23  ;;  %v1190_v5 = vld [vmem:[#allocation5 + $0x1c8] sm:$0xff]  ;;  %v1173_v7 = vld [vmem:[#allocation5 + $0x140] sm:$0xff]  ;;  %v79_v12 = vld.sshfl [vmem:[#allocation1 + $0x30] sm:$0xff pattern:$0x73625140]  ;;  %v94_v15 = vpack.c.bf16 %v78_v11, %v78_v11 }
  0x26   :  { %657 = vmatpush.bf16.msra.mxu3 %v1159_v24  ;;  %v1181_v8 = vld [vmem:[#allocation5 + $0x180] sm:$0xff]  ;;  %v77_v10 = vld.sshfl [vmem:[#allocation1 + $0x20] sm:$0xff pattern:$0x73625140]  ;;  %v95_v16 = vpack.c.bf16 %v79_v12, %v79_v12  ;;  %v1204_v18 = vld [vmem:[#allocation7 + $0x38] sm:$0xff] }
  0x27   :  { %619 = vmatpush.bf16.msra.mxu0 %v1134_v25  ;;  %v1189_v9 = vld [vmem:[#allocation5 + $0x1c0] sm:$0xff]  ;;  %v93_v14 = vpack.c.bf16 %v77_v10, %v77_v10  ;;  %v1203_v19 = vld [vmem:[#allocation7 + $0x30] sm:$0xff]  ;;  %v1202_v20 = vld [vmem:[#allocation7 + $0x28] sm:$0xff] }
  0x28   :  { %632 = vmatpush.bf16.msra.mxu1 %v1142_v26  ;;  %v80_v13 = vld.sshfl [vmem:[#allocation1 + $0x38] sm:$0xff pattern:$0x73625140]  ;;  %v1200_v22 = vld [vmem:[#allocation7 + $0x18] sm:$0xff]  ;;  %v1199_v24 = vld [vmem:[#allocation7 + $0x10] sm:$0xff] }
  0x29   :  { %645 = vmatpush.bf16.msra.mxu2 %v1150_v27  ;;  %v96_v17 = vpack.c.bf16 %v80_v13, %v80_v13  ;;  %v1201_v21 = vld [vmem:[#allocation7 + $0x20] sm:$0xff]  ;;  %v1198_v26 = vld [vmem:[#allocation7 + $0x8] sm:$0xff] }
  0x2a   :  { %658 = vmatpush.bf16.msra.mxu3 %v1158_v28 }
  0x2b   :  { %620 = vmatpush.bf16.msra.mxu0 %v1133_v30  ;;  %v1197_v30 = vld [vmem:[#allocation7] sm:$0xff] }
  0x2c   :  { %633 = vmatpush.bf16.msra.mxu1 %v1141_v31 }
  0x2d   :  { %646 = vmatpush.bf16.msra.mxu2 %v1149_v32  ;;  %v1211_v32 = vld [vmem:[%s1375_s2] ss:$0 sm:$0xff] }
  0x2e   :  { %659 = vmatpush.bf16.msra.mxu3 %v1157_v33  ;;  %621 = vmatmul.bf16.vlgmr.msra.gmra.mxu0 %v89_v43 }
  0x2f   :  { %665 = vmatpush.bf16.msrb.mxu0 %v1172_v34  ;;  %634 = vmatmul.bf16.vlgmr.msra.gmra.mxu1 %v90_v45 }
  0x30   :  { %678 = vmatpush.bf16.msrb.mxu1 %v1180_v35  ;;  %647 = vmatmul.bf16.vlgmr.msra.gmra.mxu2 %v91_v42 }
  0x31   :  { %691 = vmatpush.bf16.msrb.mxu2 %v1188_v40  ;;  %660 = vmatmul.bf16.vlgmr.msra.gmra.mxu3 %v92_v44 }
  0x32   :  { %704 = vmatpush.bf16.msrb.mxu3 %v1196_v41 }
  0x33   :  { %666 = vmatpush.bf16.msrb.mxu0 %v1171_v46 }
  0x34   :  { %679 = vmatpush.bf16.msrb.mxu1 %v1179_v47 }
  0x35   :  { %692 = vmatpush.bf16.msrb.mxu2 %v1187_v48 }
  0x36   :  { %705 = vmatpush.bf16.msrb.mxu3 %v1195_v49 }
  0x37   :  { %667 = vmatpush.bf16.msrb.mxu0 %v1170_v50 }
  0x38   :  { %680 = vmatpush.bf16.msrb.mxu1 %v1178_v51 }
  0x39   :  { %693 = vmatpush.bf16.msrb.mxu2 %v1186_v52 }
  0x3a   :  { %706 = vmatpush.bf16.msrb.mxu3 %v1194_v53  ;;  %v1212_v53 = vld [vmem:[%s1377_s4] ss:$0 sm:$0xff]  ;;  %s1324_s4 = smov [#allocation8]  }
  0x3b   :  { %668 = vmatpush.bf16.msrb.mxu0 %v1169_v54  ;;  %s832_s10 = sshll.u32 %s1324_s4, 4  ;;  %s833_s10 = int_to_ptr.vmem [resolvable:$true] %s832_s10 }
  0x3c   :  { %681 = vmatpush.bf16.msrb.mxu1 %v1177_v55 }
  0x3d   :  { %694 = vmatpush.bf16.msrb.mxu2 %v1185_v56 }
  0x3e   :  { %707 = vmatpush.bf16.msrb.mxu3 %v1193_v57 }
  0x3f   :  { %669 = vmatpush.bf16.msrb.mxu0 %v1168_v58 }
  0x40   :  { %682 = vmatpush.bf16.msrb.mxu1 %v1176_v59 }
  0x41   :  { %695 = vmatpush.bf16.msrb.mxu2 %v1184_v60 }
  0x42   :  { %708 = vmatpush.bf16.msrb.mxu3 %v1192_v61 }
  0x43   :  { %670 = vmatpush.bf16.msrb.mxu0 %v1167_v62 }
  0x44   :  { %683 = vmatpush.bf16.msrb.mxu1 %v1175_v63 }
  0x45   :  { %696 = vmatpush.bf16.msrb.mxu2 %v1183_v0 }
  0x46   :  { %709 = vmatpush.bf16.msrb.mxu3 %v1191_v1 }
  0x47   :  { %671 = vmatpush.bf16.msrb.mxu0 %v1166_v2 }
  0x48   :  { %684 = vmatpush.bf16.msrb.mxu1 %v1174_v3 }
  0x49   :  { %697 = vmatpush.bf16.msrb.mxu2 %v1182_v4 }
  0x4a   :  { %710 = vmatpush.bf16.msrb.mxu3 %v1190_v5 }
  0x4b   :  { %672 = vmatpush.bf16.msrb.mxu0 %v1165_v6 }
  0x4c   :  { %685 = vmatpush.bf16.msrb.mxu1 %v1173_v7 }
  0x4d   :  { %698 = vmatpush.bf16.msrb.mxu2 %v1181_v8 }
  0x4e   :  { %711 = vmatpush.bf16.msrb.mxu3 %v1189_v9  ;;  %673 = vmatmul.bf16.vlgmr.msrb.gmra.mxu0 %v93_v14 }
  0x4f   :  { %686 = vmatmul.bf16.vlgmr.msrb.gmra.mxu1 %v94_v15  ;;  %787 = vmatpush.bf16.msra.mxu0 %v1204_v18 }
  0x50   :  { %699 = vmatmul.bf16.vlgmr.msrb.gmra.mxu2 %v95_v16 }
  0x51   :  { %712 = vmatmul.bf16.vlgmr.msrb.gmra.mxu3 %v96_v17 }
  0x53   :  { %788 = vmatpush.bf16.msra.mxu0 %v1203_v19 }
  0x57   :  { %789 = vmatpush.bf16.msra.mxu0 %v1202_v20 }
  0x5b   :  { %790 = vmatpush.bf16.msra.mxu0 %v1201_v21 }
  0x5f   :  { %791 = vmatpush.bf16.msra.mxu0 %v1200_v22 }
  0x63   :  { %792 = vmatpush.bf16.msra.mxu0 %v1199_v24 }
  0x67   :  { %793 = vmatpush.bf16.msra.mxu0 %v1198_v26 }
  0x6b   :  { %794 = vmatpush.bf16.msra.mxu0 %v1197_v30 }
  0xab   :  { %v622_v23 = vpop.f32.mrf.mxu0 }
  0xac   :  { %v635_v25 = vpop.f32.mrf.mxu1  ;;  %v623_v35 = vadd.f32 %v1211_v32, %v622_v23 }
  0xae   :  { %v636_v36 = vadd.f32 %v635_v25, %v623_v35 }
  0xb3   :  { %v648_v27 = vpop.f32.mrf.mxu2  ;;  %v624_v29 = vpop.f32.mrf.mxu0 }
  0xb4   :  { %v661_v28 = vpop.f32.mrf.mxu3  ;;  %v637_v31 = vpop.f32.mrf.mxu1  ;;  %v649_v37 = vadd.f32 %v648_v27, %v636_v36 }
  0xb6   :  { %v662_v38 = vadd.f32 %v661_v28, %v649_v37 }
  0xbb   :  { %v650_v33 = vpop.f32.mrf.mxu2 }
  0xbc   :  { %v663_v34 = vpop.f32.mrf.mxu3 }
  0xcb   :  { %v674_v39 = vpop.f32.mrf.mxu0 }
  0xcc   :  { %v687_v40 = vpop.f32.mrf.mxu1  ;;  %v675_v41 = vadd.f32 %v674_v39, %v662_v38 }
  0xce   :  { %v688_v42 = vadd.f32 %v687_v40, %v675_v41 }
  0xd3   :  { %v700_v43 = vpop.f32.mrf.mxu2  ;;  %v676_v46 = vpop.f32.mrf.mxu0 }
  0xd4   :  { %v713_v44 = vpop.f32.mrf.mxu3  ;;  %v701_v45 = vadd.f32 %v700_v43, %v688_v42  ;;  %v689_v47 = vpop.f32.mrf.mxu1 }
  0xd6   :  { %v714_v48 = vadd.f32 %v713_v44, %v701_v45 }
  0xd8   :  { %v717_v49 = vmax.f32 %v714_v48, 0.0 }
  0xda   :  { %v718_v50 = vpack.c.bf16 %v717_v49, %v717_v49 }
  0xdb   :  { %v702_v51 = vpop.f32.mrf.mxu2 }
  0xdc   :  { %v715_v52 = vpop.f32.mrf.mxu3  ;;  %795 = vmatmul.bf16.vlgmr.msra.gmra.mxu0 %v718_v50 }
 0x159   :  { %v796_v54 = vpop.f32.mrf.mxu0 }
 0x15a   :  { %v797_v55 = vadd.f32 %v1212_v53, %v796_v54 }
 0x15c   :  { %v801_v56 = vsel %vm800_vm0, %v797_v55, -inf }
 0x15d   :  { %802 = vmax.xlane.f32.xlu0 %v801_v56 }
 0x161   :  { %v798_v57 = vpop.f32.mrf.mxu0 }
 0x1d0   :  { %v803_v58 = vpop.xlane.xlu0 %802 }
 0x1d1   :  { %v804_v59 = vsub.f32 %v797_v55, %v803_v58 }
 0x1d3   :  { %v805_v60 = vmul.f32 1.442695, %v804_v59 }
 0x1d5   :  { %1213 = vpow2.f32 %v805_v60 }
 0x1db   :  { %v1214_v61 = vpop.eup %1213 }
 0x1dc   :  { %v807_v62 = vsel %vm800_vm0, %v1214_v61, 0.0 }
 0x1dd   :  { %808 = vadd.xlane.f32.xlu0 %v807_v62 }
 0x250   :  { %v809_v63 = vpop.xlane.xlu0 %808 }
 0x251   :  { %1215 = vrcp.f32 %v809_v63  ;;  %v821_v3 = vand.u32 2147483648, %v809_v63  ;;  %v819_v5 = vand.u32 2147483647, %v809_v63  ;;  %vm815_vm2 = vweird.f32 %v809_v63 }
 0x253   :  { %v822_v7 = vor.u32 1.1754944e-38, %v821_v3  ;;  %vm820_vm4 = vcmp.eq.f32.partialorder %v819_v5, 8.507059e+37 }
 0x257   :  { %v1216_v0 = vpop.eup %1215 }
 0x258   :  { %v811_v1 = vmul.f32 %v1216_v0, %v809_v63  ;;  %vm816_vm1 = vweird.f32 %v1216_v0 }
 0x259   :  { %vm817_vm3 = vmor %vm815_vm2, %vm816_vm1 }
 0x25a   :  { %v812_v2 = vsub.f32 1.0, %v811_v1 }
 0x25c   :  { %v813_v4 = vmul.f32 %v1216_v0, %v812_v2 }
 0x25e   :  { %v814_v6 = vadd.f32 %v1216_v0, %v813_v4 }
 0x260   :  { %v818_v8 = vsel %vm817_vm3, %v1216_v0, %v814_v6 }
 0x261   :  { %v823_v9 = vsel %vm820_vm4, %v822_v7, %v818_v8 }
 0x262   :  { %v824_v10 = vmul.f32 %v1214_v61, %v823_v9 }
 0x264   :  { %826 = vst.msk [vmem:[#allocation8] sm:$0x3] %vm825_vm5, %v824_v10 }
 0x265   :  { %837 = dma.vmem_to_hbm [thread:$0]  %s833_s10, 32, %s835_s13, [#allocation4]  }
 0x266   :  { %1317 = dma.done.wait [#allocation4], 32  }
 0x267   :  { %1318 = vsyncadd [#allocation4], 4294967264 }
 0x268   :  { %842 = vsyncpa [#allocation3], 1 }
 0x269   :  { %843 = vsyncpa [#allocation6], 1 }
 0x26a   :  { %844 = vsyncpa [#allocation4], 1 }

</bundles_post_ra>
